<compile_context>
chip_gen: v7x
topology: tpu7x:2x2x1
jax: 0.10.0
libtpu: 0.0.40
codegen_flags: <defaults>
</compile_context>

<pallas_src>
import jax
import jax.numpy as jnp
from jax import lax
from jax.experimental import pallas as pl
from jax.experimental.pallas import tpu as pltpu

DICE_WEIGHT = 0.7
BCE_WEIGHT = 0.3
SMOOTH = 1e-6

_LANES = 128
_SUBLANES = 8
_ALIGN_ROWS = 16                       # satisfies f32 (8,128) and bf16 (16,128) tiling
_ALIGN_ELEMS = _ALIGN_ROWS * _LANES    # 2048: zero-copy path requires n % 2048 == 0
_CHUNK_ROWS = 512                      # fused inner-loop chunk (bounds VMEM live ranges)


def _chip_kind():
    try:
        return jax.devices()[0].device_kind.lower()
    except Exception:
        return ""


def _elementwise(x, t):
    """Stable BCE-with-logits + sigmoid products; exp(-|x|) shared (1 EUP exp)."""
    e = jnp.exp(-jnp.abs(x))
    bce = jnp.maximum(x, 0.0) - x * t + jnp.log1p(e)
    inv = 1.0 / (1.0 + e)
    p = jnp.where(x >= 0.0, inv, e * inv)          # == sigmoid(x)
    return bce, p * t, p + t


def hybrid_loss(pred, target, dice_weight=DICE_WEIGHT, bce_weight=BCE_WEIGHT,
                smooth=SMOOTH, narrow_target_stream=True):
    assert pred.shape == target.shape
    n = pred.size

    # ---- streaming layout (no upcasts; optional narrow target stream) ----
    pred_flat = pred.reshape(-1)                   # free for contiguous inputs
    tgt_flat = target.reshape(-1)
    if narrow_target_stream and tgt_flat.dtype in (jnp.float32, jnp.float64):
        # 0/1 masks are exact in bf16 and halve the target HBM stream.
        # Disable for soft (non-binary) targets that must keep full precision.
        tgt_flat = tgt_flat.astype(jnp.bfloat16)

    if n % _ALIGN_ELEMS:
        # Rare unaligned case: minimal zero-pad copy.  Pad values never reach the
        # sums (the kernel masks by true element index), so zeros are fine.
        pad = _ALIGN_ELEMS - n % _ALIGN_ELEMS
        pred_flat = jnp.pad(pred_flat, (0, pad))
        tgt_flat = jnp.pad(tgt_flat, (0, pad))
    rows = pred_flat.size // _LANES                # multiple of 16
    pred2d = pred_flat.reshape(rows, _LANES)
    tgt2d = tgt_flat.reshape(rows, _LANES)

    # ---- per-generation tiling ----
    kind = _chip_kind()
    is_v7 = "v7" in kind
    max_tile_rows = 4096 if is_v7 else 8192        # cap tiles for v7x's 64 MiB VMEM
    vmem_limit = (48 if is_v7 else 64) * 1024 * 1024

    tile_rows = min(rows, max_tile_rows)           # multiple of 16, <= rows
    tiles = pl.cdiv(rows, tile_rows)
    # 2-way split only where it can land on two TensorCores (v7x) and divides
    # evenly (no fully-out-of-range grid tiles).  If profiling shows "parallel"
    # not sharding across TCs on v7x, switch to pltpu.CORE_PARALLEL here.
    num_splits = 2 if (is_v7 and tiles % 2 == 0) else 1
    tiles_per_split = tiles // num_splits

    chunk = _CHUNK_ROWS if tile_rows >= _CHUNK_ROWS else tile_rows
    full_chunks = tile_rows // chunk
    rem_rows = tile_rows - full_chunks * chunk     # multiple of 16

    full_rows = n // _LANES                        # fully-valid rows
    rem_lanes = n % _LANES                         # valid lanes in row `full_rows`
    grid_rows = num_splits * tiles_per_split * tile_rows
    any_tail = grid_rows > full_rows               # some tile touches invalid data
    all_tail = tile_rows > full_rows               # even the first tile does

    def tile_sums(pred_ref, tgt_ref, tile_row0, masked):
        """Fused single-pass partial sums for one tile -> three (8,128) vregs."""

        def chunk_sums(r0, nrows):
            x = pred_ref[pl.ds(r0, nrows), :].astype(jnp.float32)
            t = tgt_ref[pl.ds(r0, nrows), :].astype(jnp.float32)
            bce, pt, ppt = _elementwise(x, t)
            if masked:
                row = (tile_row0 + r0
                       + lax.broadcasted_iota(jnp.int32, (nrows, _LANES), 0))
                lane = lax.broadcasted_iota(jnp.int32, (nrows, _LANES), 1)
                valid = (row < full_rows) | ((row == full_rows) & (lane < rem_lanes))
                bce = jnp.where(valid, bce, 0.0)
                pt = jnp.where(valid, pt, 0.0)
                ppt = jnp.where(valid, ppt, 0.0)
            return (jnp.sum(bce.reshape(-1, _SUBLANES, _LANES), axis=0),
                    jnp.sum(pt.reshape(-1, _SUBLANES, _LANES), axis=0),
                    jnp.sum(ppt.reshape(-1, _SUBLANES, _LANES), axis=0))

        zero = jnp.zeros((_SUBLANES, _LANES), jnp.float32)
        sums = (zero, zero, zero)
        if full_chunks > 0:
            def body(j, carry):
                r0 = pl.multiple_of(j * chunk, chunk)
                cs = chunk_sums(r0, chunk)
                return tuple(a + b for a, b in zip(carry, cs))
            sums = lax.fori_loop(0, full_chunks, body, sums)
        if rem_rows > 0:
            cs = chunk_sums(full_chunks * chunk, rem_rows)
            sums = tuple(a + b for a, b in zip(sums, cs))
        return sums

    def kernel(pred_ref, tgt_ref, acc_ref):
        c = pl.program_id(0)
        i = pl.program_id(1)

        @pl.when(i == 0)
        def _init():
            acc_ref[...] = jnp.zeros_like(acc_ref)

        tile_row0 = (c * tiles_per_split + i) * tile_rows

        def accumulate(masked):
            s_bce, s_pt, s_ppt = tile_sums(pred_ref, tgt_ref, tile_row0, masked)
            acc_ref[0, 0] += s_bce
            acc_ref[0, 1] += s_pt
            acc_ref[0, 2] += s_ppt

        if not any_tail:                 # statically known: no tile ever ragged
            accumulate(False)
        elif all_tail:                   # statically known: every tile ragged
            accumulate(True)
        else:
            needs_mask = tile_row0 > (full_rows - tile_rows)

            @pl.when(needs_mask)
            def _tail():
                accumulate(True)

            @pl.when(jnp.logical_not(needs_mask))
            def _bulk():
                accumulate(False)

    in_bytes = (pred2d.size * pred2d.dtype.itemsize
                + tgt2d.size * tgt2d.dtype.itemsize)
    out_bytes = num_splits * 3 * _SUBLANES * _LANES * 4
    cost = pl.CostEstimate(flops=14 * rows * _LANES,
                           transcendentals=3 * rows * _LANES,
                           bytes_accessed=in_bytes + out_bytes)

    partials = pl.pallas_call(
        kernel,
        out_shape=jax.ShapeDtypeStruct(
            (num_splits, 3, _SUBLANES, _LANES), jnp.float32),
        grid_spec=pltpu.PrefetchScalarGridSpec(
            num_scalar_prefetch=0,
            grid=(num_splits, tiles_per_split),
            in_specs=[
                pl.BlockSpec((tile_rows, _LANES),
                             lambda c, i: (c * tiles_per_split + i, 0)),
                pl.BlockSpec((tile_rows, _LANES),
                             lambda c, i: (c * tiles_per_split + i, 0)),
            ],
            out_specs=pl.BlockSpec((1, 3, _SUBLANES, _LANES),
                                   lambda c, i: (c, 0, 0, 0)),
        ),
        compiler_params=pltpu.CompilerParams(
            dimension_semantics=("parallel", "arbitrary"),
            vmem_limit_bytes=vmem_limit),
        cost_estimate=cost,
    )(pred2d, tgt2d)

    sums = jnp.sum(partials, axis=(0, 2, 3))       # tiny (splits,3,8,128) -> (3,)
    bce_sum, intersection, denominator = sums[0], sums[1], sums[2]
    bce_loss = bce_sum / jnp.float32(n)
    dice_loss = 1.0 - (2.0 * intersection + smooth) / (denominator + smooth)
    return bce_weight * bce_loss + dice_weight * dice_loss


def _reference(pred, target, dice_weight=DICE_WEIGHT, bce_weight=BCE_WEIGHT,
               smooth=SMOOTH):
    x = pred.astype(jnp.float32)
    t = target.astype(jnp.float32)
    bce = jnp.mean(jnp.maximum(x, 0.0) - x * t + jnp.log1p(jnp.exp(-jnp.abs(x))))
    p = jax.nn.sigmoid(x)
    inter = jnp.sum(p * t)
    denom = jnp.sum(p + t)
    dice = 1.0 - (2.0 * inter + smooth) / (denom + smooth)
    return bce_weight * bce + dice_weight * dice


if __name__ == "__main__":
    key = jax.random.PRNGKey(0)
    k1, k2 = jax.random.split(key)
    # NCHW like the PyTorch module: batch=2, channels=4, spatial=16x16
    pred = jax.random.normal(k1, (2, 4, 16, 16), dtype=jnp.float32)
    target = (jax.random.uniform(k2, (2, 4, 16, 16)) > 0.5).astype(jnp.float32)

    loss = jax.block_until_ready(hybrid_loss(pred, target))

    ref = _reference(pred, target)
    assert jnp.allclose(loss, ref, rtol=1e-5, atol=1e-5), (loss, ref)
    print("KERNEL_OK")
</pallas_src>

<mosaic_0001>
module attributes {stable_mosaic.version = 11 : i64} {
  func.func @kernel(%arg0: i32, %arg1: i32, %arg2: memref<16x128xf32, #tpu.memory_space<vmem>>, %arg3: memref<16x128xbf16, #tpu.memory_space<vmem>>, %arg4: memref<1x3x8x128xf32, #tpu.memory_space<vmem>>) attributes {dimension_semantics = [#tpu.dimension_semantics<parallel>, #tpu.dimension_semantics<arbitrary>], iteration_bounds = array<i64: 1, 1>, scalar_prefetch = 0 : i64, scratch_operands = 0 : i64, tpu.core_type = #tpu.core_type<tc>, window_params = [{transform_indices = @transform_0, window_bounds = array<i64: 16, 128>}, {transform_indices = @transform_1, window_bounds = array<i64: 16, 128>}, {transform_indices = @transform_2, window_bounds = array<i64: 1, 3, 8, 128>}]} {
    %c0_i32 = arith.constant 0 : i32
    %0 = arith.cmpi eq, %arg1, %c0_i32 : i32
    %1 = arith.extui %0 : i1 to i32
    %c0_i32_0 = arith.constant 0 : i32
    %2 = arith.cmpi ne, %1, %c0_i32_0 : i32
    scf.if %2 {
      %cst_33 = arith.constant 0.000000e+00 : f32
      %58 = vector.broadcast %cst_33 : f32 to vector<1x3x8x128xf32>
      %c0_34 = arith.constant 0 : index
      %c0_35 = arith.constant 0 : index
      %c0_36 = arith.constant 0 : index
      %c0_37 = arith.constant 0 : index
      %59 = vector.load %arg4[%c0_34, %c0_35, %c0_36, %c0_37] : memref<1x3x8x128xf32, #tpu.memory_space<vmem>>, vector<1x3x8x128xf32>
      tpu.vector_store %arg4[%c0_34, %c0_35, %c0_36, %c0_37], %58 {strides = array<i32>} : memref<1x3x8x128xf32, #tpu.memory_space<vmem>>, vector<1x3x8x128xf32>,
    } else {
    }
    %cst = arith.constant 0.000000e+00 : f32
    %3 = vector.broadcast %cst : f32 to vector<8x128xf32>
    %c0_i32_1 = arith.constant 0 : i32
    %c16_i32 = arith.constant 16 : i32
    %4 = arith.muli %c0_i32_1, %c16_i32 : i32
    %5 = tpu.assume_multiple %4, 16 : i32
    %6 = arith.index_cast %5 : i32 to index
    %c0 = arith.constant 0 : index
    %7 = vector.load %arg2[%6, %c0] : memref<16x128xf32, #tpu.memory_space<vmem>>, vector<16x128xf32>
    %8 = arith.index_cast %5 : i32 to index
    %c0_2 = arith.constant 0 : index
    %9 = vector.load %arg3[%8, %c0_2] : memref<16x128xbf16, #tpu.memory_space<vmem>>, vector<16x128xbf16>
    %10 = arith.extf %9 : vector<16x128xbf16> to vector<16x128xf32>
    %11 = math.absf %7 : vector<16x128xf32>
    %cst_3 = arith.constant 0.000000e+00 : f32
    %12 = vector.broadcast %cst_3 : f32 to vector<16x128xf32>
    %13 = arith.subf %12, %11 : vector<16x128xf32>
    %14 = math.exp %13 : vector<16x128xf32>
    %cst_4 = arith.constant 0.000000e+00 : f32
    %15 = vector.broadcast %cst_4 : f32 to vector<16x128xf32>
    %16 = arith.maximumf %7, %15 : vector<16x128xf32>
    %17 = arith.mulf %7, %10 : vector<16x128xf32>
    %18 = arith.subf %16, %17 : vector<16x128xf32>
    %19 = math.log1p %14 : vector<16x128xf32>
    %20 = arith.addf %18, %19 : vector<16x128xf32>
    %cst_5 = arith.constant 1.000000e+00 : f32
    %21 = vector.broadcast %cst_5 : f32 to vector<16x128xf32>
    %22 = arith.addf %21, %14 : vector<16x128xf32>
    %cst_6 = arith.constant 1.000000e+00 : f32
    %23 = vector.broadcast %cst_6 : f32 to vector<16x128xf32>
    %24 = arith.divf %23, %22 : vector<16x128xf32>
    %cst_7 = arith.constant 0.000000e+00 : f32
    %25 = vector.broadcast %cst_7 : f32 to vector<16x128xf32>
    %26 = arith.cmpf oge, %7, %25 : vector<16x128xf32>
    %27 = arith.mulf %14, %24 : vector<16x128xf32>
    %28 = arith.select %26, %24, %27 : vector<16x128xi1>, vector<16x128xf32>
    %29 = arith.mulf %28, %10 : vector<16x128xf32>
    %30 = arith.addf %28, %10 : vector<16x128xf32>
    %31 = vector.shape_cast %20 : vector<16x128xf32> to vector<2x8x128xf32>
    %cst_8 = arith.constant dense<0.000000e+00> : vector<8x128xf32>
    %32 = vector.multi_reduction <add>, %31, %cst_8 [0] : vector<2x8x128xf32> to vector<8x128xf32>
    %33 = vector.shape_cast %29 : vector<16x128xf32> to vector<2x8x128xf32>
    %cst_9 = arith.constant dense<0.000000e+00> : vector<8x128xf32>
    %34 = vector.multi_reduction <add>, %33, %cst_9 [0] : vector<2x8x128xf32> to vector<8x128xf32>
    %35 = vector.shape_cast %30 : vector<16x128xf32> to vector<2x8x128xf32>
    %cst_10 = arith.constant dense<0.000000e+00> : vector<8x128xf32>
    %36 = vector.multi_reduction <add>, %35, %cst_10 [0] : vector<2x8x128xf32> to vector<8x128xf32>
    %37 = arith.addf %3, %32 : vector<8x128xf32>
    %38 = arith.addf %3, %34 : vector<8x128xf32>
    %39 = arith.addf %3, %36 : vector<8x128xf32>
    %c1_i32 = arith.constant 1 : i32
    %c0_11 = arith.constant 0 : index
    %c0_12 = arith.constant 0 : index
    %c0_13 = arith.constant 0 : index
    %c0_14 = arith.constant 0 : index
    %40 = vector.load %arg4[%c0_11, %c0_12, %c0_13, %c0_14] : memref<1x3x8x128xf32, #tpu.memory_space<vmem>>, vector<1x1x8x128xf32>
    %41 = vector.shape_cast %40 : vector<1x1x8x128xf32> to vector<8x128xf32>
    %42 = arith.addf %41, %37 : vector<8x128xf32>
    %c0_15 = arith.constant 0 : index
    %c0_16 = arith.constant 0 : index
    %c0_17 = arith.constant 0 : index
    %c0_18 = arith.constant 0 : index
    %43 = vector.load %arg4[%c0_15, %c0_16, %c0_17, %c0_18] : memref<1x3x8x128xf32, #tpu.memory_space<vmem>>, vector<1x1x8x128xf32>
    %44 = vector.shape_cast %43 : vector<1x1x8x128xf32> to vector<8x128xf32>
    %45 = vector.shape_cast %42 : vector<8x128xf32> to vector<1x1x8x128xf32>
    tpu.vector_store %arg4[%c0_15, %c0_16, %c0_17, %c0_18], %45 {strides = array<i32>} : memref<1x3x8x128xf32, #tpu.memory_space<vmem>>, vector<1x1x8x128xf32>,
    %c0_19 = arith.constant 0 : index
    %c1 = arith.constant 1 : index
    %c0_20 = arith.constant 0 : index
    %c0_21 = arith.constant 0 : index
    %46 = vector.load %arg4[%c0_19, %c1, %c0_20, %c0_21] : memref<1x3x8x128xf32, #tpu.memory_space<vmem>>, vector<1x1x8x128xf32>
    %47 = vector.shape_cast %46 : vector<1x1x8x128xf32> to vector<8x128xf32>
    %48 = arith.addf %47, %38 : vector<8x128xf32>
    %c0_22 = arith.constant 0 : index
    %c1_23 = arith.constant 1 : index
    %c0_24 = arith.constant 0 : index
    %c0_25 = arith.constant 0 : index
    %49 = vector.load %arg4[%c0_22, %c1_23, %c0_24, %c0_25] : memref<1x3x8x128xf32, #tpu.memory_space<vmem>>, vector<1x1x8x128xf32>
    %50 = vector.shape_cast %49 : vector<1x1x8x128xf32> to vector<8x128xf32>
    %51 = vector.shape_cast %48 : vector<8x128xf32> to vector<1x1x8x128xf32>
    tpu.vector_store %arg4[%c0_22, %c1_23, %c0_24, %c0_25], %51 {strides = array<i32>} : memref<1x3x8x128xf32, #tpu.memory_space<vmem>>, vector<1x1x8x128xf32>,
    %c0_26 = arith.constant 0 : index
    %c2 = arith.constant 2 : index
    %c0_27 = arith.constant 0 : index
    %c0_28 = arith.constant 0 : index
    %52 = vector.load %arg4[%c0_26, %c2, %c0_27, %c0_28] : memref<1x3x8x128xf32, #tpu.memory_space<vmem>>, vector<1x1x8x128xf32>
    %53 = vector.shape_cast %52 : vector<1x1x8x128xf32> to vector<8x128xf32>
    %54 = arith.addf %53, %39 : vector<8x128xf32>
    %c0_29 = arith.constant 0 : index
    %c2_30 = arith.constant 2 : index
    %c0_31 = arith.constant 0 : index
    %c0_32 = arith.constant 0 : index
    %55 = vector.load %arg4[%c0_29, %c2_30, %c0_31, %c0_32] : memref<1x3x8x128xf32, #tpu.memory_space<vmem>>, vector<1x1x8x128xf32>
    %56 = vector.shape_cast %55 : vector<1x1x8x128xf32> to vector<8x128xf32>
    %57 = vector.shape_cast %54 : vector<8x128xf32> to vector<1x1x8x128xf32>
    tpu.vector_store %arg4[%c0_29, %c2_30, %c0_31, %c0_32], %57 {strides = array<i32>} : memref<1x3x8x128xf32, #tpu.memory_space<vmem>>, vector<1x1x8x128xf32>,
    return
  }
  func.func @transform_0(%arg0: i32, %arg1: i32) -> (i32, i32) {
    %c1_i32 = arith.constant 1 : i32
    %0 = arith.muli %arg0, %c1_i32 : i32
    %1 = arith.addi %0, %arg1 : i32
    %c0_i32 = arith.constant 0 : i32
    %c0_i32_0 = arith.constant 0 : i32
    return %1, %c0_i32 : i32, i32
  }
  func.func @transform_1(%arg0: i32, %arg1: i32) -> (i32, i32) {
    %c1_i32 = arith.constant 1 : i32
    %0 = arith.muli %arg0, %c1_i32 : i32
    %1 = arith.addi %0, %arg1 : i32
    %c0_i32 = arith.constant 0 : i32
    %c0_i32_0 = arith.constant 0 : i32
    return %1, %c0_i32 : i32, i32
  }
  func.func @transform_2(%arg0: i32, %arg1: i32) -> (i32, i32, i32, i32) {
    %c0_i32 = arith.constant 0 : i32
    %c0_i32_0 = arith.constant 0 : i32
    %c0_i32_1 = arith.constant 0 : i32
    %c0_i32_2 = arith.constant 0 : i32
    return %arg0, %c0_i32, %c0_i32_0, %c0_i32_1 : i32, i32, i32, i32
  }
}

</mosaic_0001>

<bundles_post_ra>
// kernel: tpu_custom_call.1
= control target key start
LH: loop header
LB: loop body
LE: loop exit
PB: predicated region body
PF: predicated region fallthrough
CT: control target
= control target key end

     0   :  { %7 = vsyncpa [#allocation3], 0  ;;  %s310_s0 = inlined_call_operand.hbm [shape: f32[16,128], index: 0, kind: input, shape index: {}]   ;;  %s311_s1 = inlined_call_operand.hbm [shape: bf16[16,128], index: 1, kind: input, shape index: {}]   ;;  %s312_s2 = inlined_call_operand.hbm [shape: f32[1,3,8,128], index: 2, kind: output, shape index: {}]  }
   0x1   :  { %8 = vsyncpa [#allocation6], 0 }
   0x2   :  { %9 = vsyncpa [#allocation4], 0  ;;  %s246_s9 = smov [#allocation2]   ;;  %s174_s13 = scalar_lea.hbm %s310_s0, 256 }
   0x3   :  { %s19_s10 = sshll.u32 %s246_s9, 4  ;;  %p175_p0 = scmp.ne.s32.totalorder %s310_s0, %s174_s13  ;;  %s20_s10 = int_to_ptr.vmem [resolvable:$true] %s19_s10 }
   0x4   :  { %p178_p1 = scmp.lt.u32.totalorder %s174_s13, %s310_s0 }
   0x6   :  { %p180_p2 = pnand %p178_p1, %p175_p0 }
   0x8   :  { %183 = shalt.err (!%p180_p2)
}
   0x9   :  { %s184_s18 = scalar_lea.vmem %s20_s10, 256  ;;  %p189_p4 = scmp.lt.s32.totalorder %s20_s10, %s20_s10 }
   0xa   :  { %p185_p3 = scmp.ne.s32.totalorder %s20_s10, %s184_s18  ;;  %p190_p5 = scmp.lt.s32.totalorder %s184_s18, %s184_s18 }
   0xc   :  { %p191_p6 = por %p190_p5, %p189_p4 }
   0xe   :  { %p192_p7 = pnand %p191_p6, %p185_p3 }
  0x10   :  { %195 = shalt.err (!%p192_p7)
}
  0x11   :  { %s247_s19 = smov 128   ;;  %s248_s20 = smov 8  }
  0x12   :  { %25 = dma.hbm_to_vmem [thread:$0]  %s310_s0, 256, %s20_s10, [#allocation3], %s247_s19, %s247_s19, %s248_s20  }
  0x13   :  { %s249_s23 = smov [#allocation5]   ;;  %s196_s27 = scalar_lea.hbm %s311_s1, 128 }
  0x14   :  { %s35_s24 = sshll.u32 %s249_s23, 4  ;;  %p197_p8 = scmp.ne.s32.totalorder %s311_s1, %s196_s27  ;;  %s36_s24 = int_to_ptr.vmem [resolvable:$true] %s35_s24 }
  0x15   :  { %p200_p9 = scmp.lt.u32.totalorder %s196_s27, %s311_s1 }
  0x17   :  { %p202_p10 = pnand %p200_p9, %p197_p8 }
  0x19   :  { %205 = shalt.err (!%p202_p10)
}
  0x1a   :  { %s206_s4 = scalar_lea.vmem %s36_s24, 128  ;;  %p211_p12 = scmp.lt.s32.totalorder %s36_s24, %s36_s24 }
  0x1b   :  { %p207_p11 = scmp.ne.s32.totalorder %s36_s24, %s206_s4  ;;  %p212_p13 = scmp.lt.s32.totalorder %s206_s4, %s206_s4 }
  0x1d   :  { %p213_p0 = por %p212_p13, %p211_p12 }
  0x1f   :  { %p214_p1 = pnand %p213_p0, %p207_p11 }
  0x21   :  { %217 = shalt.err (!%p214_p1)
}
  0x22   :  { %s250_s0 = smov 64   ;;  %s251_s5 = smov 4  }
  0x23   :  { %41 = dma.hbm_to_vmem [thread:$0]  %s311_s1, 128, %s36_s24, [#allocation6], %s250_s0, %s250_s0, %s251_s5  }
  0x24   :  { %240 = dma.done.wait [#allocation3], 256  }
  0x25   :  { %241 = vsyncadd [#allocation3], 4294967040 }
  0x26   :  { %242 = dma.done.wait [#allocation6], 128  }
  0x27   :  { %243 = vsyncadd [#allocation6], 4294967168  ;;  %v59_v0 = vld [vmem:[#allocation2] sm:$0xff]  ;;  %v60_v1 = vld [vmem:[#allocation2 + $0x8] sm:$0xff]  ;;  %s252_s1 = smov [#allocation7]  }
  0x28   :  { %v65_v2 = vand.u32 2147483647, %v59_v0  ;;  %v66_v3 = vand.u32 2147483647, %v60_v1  ;;  %v151_v11 = vld [vmem:[#allocation5] sm:$0xff]   ;;  %v73_v18 = vmax.f32 %v59_v0, 0.0 }
  0x29   :  { %v152_v14 = vunpack.c.l.bf16 %v151_v11  ;;  %v153_v16 = vunpack.c.h.bf16 %v151_v11  ;;  %v74_v22 = vmax.f32 %v60_v1, 0.0  ;;  %vm105_vm2 = vcmp.ge.f32.partialorder %v59_v0, 0.0  ;;  %s137_s8 = sshll.u32 %s252_s1, 4  ;;  %s138_s8 = int_to_ptr.vmem [resolvable:$true] %s137_s8 }
  0x2a   :  { %v67_v4 = vsub.f32 0.0, %v65_v2  ;;  %v68_v5 = vsub.f32 0.0, %v66_v3  ;;  %vm106_vm3 = vcmp.ge.f32.partialorder %v60_v1, 0.0  ;;  %s218_s9 = scalar_lea.vmem %s138_s8, 384  ;;  %p223_p3 = scmp.lt.s32.totalorder %s138_s8, %s138_s8 }
  0x2b   :  { %v75_v19 = vmul.f32 %v152_v14, %v59_v0  ;;  %v76_v23 = vmul.f32 %v153_v16, %v60_v1  ;;  %p219_p2 = scmp.ne.s32.totalorder %s138_s8, %s218_s9  ;;  %p224_p4 = scmp.lt.s32.totalorder %s218_s9, %s218_s9 }
  0x2c   :  { %v69_v6 = vmul.f32 1.442695, %v67_v4  ;;  %v71_v7 = vmul.f32 1.442695, %v68_v5 }
  0x2d   :  { %v77_v27 = vsub.f32 %v73_v18, %v75_v19  ;;  %v78_v30 = vsub.f32 %v74_v22, %v76_v23  ;;  %p225_p5 = por %p224_p4, %p223_p3 }
  0x2e   :  { %162 = vpow2.f32 %v69_v6 }
  0x2f   :  { %164 = vpow2.f32 %v71_v7  ;;  %p226_p6 = pnand %p225_p5, %p219_p2 }
  0x38   :  { %v163_v8 = vpop.eup %162 }
  0x39   :  { %v165_v9 = vpop.eup %164  ;;  %v79_v10 = vadd.f32 1.0, %v163_v8  ;;  %v82_v13 = vmul.f32 -0.5, %v163_v8  ;;  %v85_v20 = vand.u32 2147483647, %v163_v8 }
  0x3a   :  { %v88_v12 = vadd.f32 1.0, %v165_v9  ;;  %v91_v15 = vmul.f32 -0.5, %v165_v9  ;;  %v94_v24 = vand.u32 2147483647, %v165_v9 }
  0x3b   :  { %166 = vlog2.f32 %v79_v10  ;;  %v83_v17 = vadd.f32 1.0, %v82_v13  ;;  %vm86_vm0 = vcmp.lt.f32.partialorder %v85_v20, 0.0004427343 }
  0x3c   :  { %168 = vlog2.f32 %v88_v12  ;;  %v92_v21 = vadd.f32 1.0, %v91_v15  ;;  %vm95_vm1 = vcmp.lt.f32.partialorder %v94_v24, 0.0004427343 }
  0x3d   :  { %170 = vrcp.f32 %v79_v10  ;;  %v84_v25 = vmul.f32 %v163_v8, %v83_v17 }
  0x3e   :  { %172 = vrcp.f32 %v88_v12  ;;  %v93_v28 = vmul.f32 %v165_v9, %v92_v21 }
  0x45   :  { %v167_v26 = vpop.eup %166 }
  0x46   :  { %v169_v29 = vpop.eup %168  ;;  %v81_v31 = vmul.f32 0.6931472, %v167_v26 }
  0x47   :  { %v171_v32 = vpop.eup %170  ;;  %v90_v33 = vmul.f32 0.6931472, %v169_v29 }
  0x48   :  { %v173_v34 = vpop.eup %172  ;;  %v87_v35 = vsel %vm86_vm0, %v84_v25, %v81_v31  ;;  %v107_v36 = vmul.f32 %v171_v32, %v163_v8 }
  0x49   :  { %v96_v37 = vsel %vm95_vm1, %v93_v28, %v90_v33  ;;  %v97_v38 = vadd.f32 %v87_v35, %v77_v27  ;;  %v108_v39 = vmul.f32 %v173_v34, %v165_v9 }
  0x4a   :  { %v98_v40 = vadd.f32 %v96_v37, %v78_v30  ;;  %v109_v41 = vsel %vm105_vm2, %v171_v32, %v107_v36 }
  0x4b   :  { %v110_v42 = vsel %vm106_vm3, %v173_v34, %v108_v39  ;;  %v111_v43 = vmul.f32 %v152_v14, %v109_v41  ;;  %v113_v44 = vadd.f32 %v152_v14, %v109_v41 }
  0x4c   :  { %v115_v45 = vadd.f32 %v98_v40, %v97_v38  ;;  %v112_v46 = vmul.f32 %v153_v16, %v110_v42  ;;  %v114_v47 = vadd.f32 %v153_v16, %v110_v42 }
  0x4e   :  { %v116_v48 = vadd.f32 %v112_v46, %v111_v43  ;;  %v117_v49 = vadd.f32 %v114_v47, %v113_v44  ;;  %123 = vst [vmem:[#allocation7] sm:$0xff] %v115_v45 }
  0x50   :  { %127 = vst [vmem:[#allocation7 + $0x8] sm:$0xff] %v116_v48  ;;  %131 = vst [vmem:[#allocation7 + $0x10] sm:$0xff] %v117_v49 }
  0x51   :  { %229 = shalt.err (!%p226_p6)
}
  0x52   :  { %s230_s12 = scalar_lea.hbm %s312_s2, 384 }
  0x53   :  { %p231_p7 = scmp.ne.s32.totalorder %s312_s2, %s230_s12  ;;  %p234_p8 = scmp.lt.u32.totalorder %s230_s12, %s312_s2 }
  0x55   :  { %p236_p9 = pnand %p234_p8, %p231_p7 }
  0x57   :  { %239 = shalt.err (!%p236_p9)
}
  0x58   :  { %143 = dma.vmem_to_hbm [thread:$0]  %s138_s8, 384, %s312_s2, [#allocation4], %s247_s19, %s247_s19, %s248_s20  }
  0x59   :  { %244 = dma.done.wait [#allocation4], 384  }
  0x5a   :  { %245 = vsyncadd [#allocation4], 4294966912 }
  0x5b   :  { %147 = vsyncpa [#allocation3], 1 }
  0x5c   :  { %148 = vsyncpa [#allocation6], 1 }
  0x5d   :  { %149 = vsyncpa [#allocation4], 1 }

</bundles_post_ra>
